<compile_context>
chip_gen: v7x
topology: tpu7x:2x2x1
jax: 0.10.0
libtpu: 0.0.40
codegen_flags: <defaults>
</compile_context>

<pallas_src>
import functools

import jax
import jax.numpy as jnp
from jax import lax
from jax.experimental import pallas as pl
from jax.experimental.pallas import tpu as pltpu


def _label_smoothing_kernel(pred_ref, tgt_ref, out_ref, *,
                            coef_off, coef_delta, num_classes, total_rows,
                            block_rows, steps_per_core, mask_rows):
    # pred_ref: (BM, C) native dtype; tgt_ref: (BM, 1) int32;
    # out_ref:  (1, 1) f32 partial accumulator, resident across the step axis.
    core = pl.program_id(0)
    step = pl.program_id(1)

    @pl.when(step == 0)
    def _init():
        out_ref[...] = jnp.zeros_like(out_ref)

    x = pred_ref[...].astype(jnp.float32)                               # (BM, C)
    bm, c = x.shape

    # ---- pass A: single read of the raw tile ------------------------------
    row_max = jnp.max(x, axis=-1, keepdims=True)                        # (BM, 1)
    sum_x = jnp.sum(x, axis=-1, keepdims=True)                          # (BM, 1)
    class_ids = lax.broadcasted_iota(jnp.int32, (1, c), 1)              # (1, C)
    at_target = class_ids == tgt_ref[...]                               # (BM, C) bool
    x_t = jnp.sum(jnp.where(at_target, x, 0.0), axis=-1, keepdims=True)  # (BM, 1)

    # ---- pass B: exp / logsumexp ------------------------------------------
    lse = row_max + jnp.log(
        jnp.sum(jnp.exp(x - row_max), axis=-1, keepdims=True))          # (BM, 1)

    # Fused per-row loss; mean (1/B) and negation folded into coefficients.
    contrib = (coef_off * (sum_x - num_classes * lse)
               + coef_delta * (x_t - lse))                              # (BM, 1)

    if mask_rows:
        # Mask padded rows on the per-row contribution (NaN/Inf-safe).
        tile_idx = core * steps_per_core + step
        row_ids = (tile_idx * block_rows
                   + lax.broadcasted_iota(jnp.int32, (bm, 1), 0))
        contrib = jnp.where(row_ids < total_rows, contrib, 0.0)

    out_ref[...] += jnp.sum(contrib, axis=0, keepdims=True)


def _detect_num_cores():
    # v7x has 2 TensorCores per chip; v5e/v6e have 1.  Heuristic, safe default 1.
    try:
        kind = jax.devices()[0].device_kind.lower()
    except Exception:
        return 1
    return 2 if "v7" in kind else 1


def _choose_block_rows(batch, num_classes, itemsize):
    # Size by the in-kernel working set: 2 double-buffered native-dtype input
    # tiles plus ~4 (BM, C) f32-equivalent temporaries after the cast/fusion.
    bytes_per_row = max(1, num_classes * (2 * itemsize + 16))
    budget_bytes = 20 * 1024 * 1024
    bm = max(1, budget_bytes // bytes_per_row)
    if bm >= batch:
        return batch                              # whole batch in one tile
    packing = max(1, 4 // itemsize)               # f32 -> 1, bf16 -> 2, int8 -> 4
    sublane = 8 * packing
    return max(sublane, (bm // sublane) * sublane)


def label_smoothing_loss(pred, target, smoothing=0.1, block_rows=None,
                         num_cores=None):
    """Pallas equivalent of LabelSmoothingLoss(smoothing).forward(pred, target)."""
    B, C = pred.shape
    if C < 2:
        raise ValueError("label_smoothing_loss requires num_classes >= 2")
    itemsize = pred.dtype.itemsize

    confidence = 1.0 - smoothing
    off = smoothing / (C - 1)
    # Fold the batch mean and the negation into the two coefficients.
    coef_off = -off / B
    coef_delta = -(confidence - off) / B

    if block_rows is None:
        block_rows = _choose_block_rows(B, C, itemsize)
    block_rows = int(min(block_rows, B))

    num_tiles = pl.cdiv(B, block_rows)
    if num_cores is None:
        num_cores = _detect_num_cores()
    num_cores = int(max(1, min(num_cores, num_tiles)))
    steps_per_core = pl.cdiv(num_tiles, num_cores)
    mask_rows = (num_cores * steps_per_core * block_rows) != B

    tgt2d = target.astype(jnp.int32).reshape(B, 1)

    kernel = functools.partial(
        _label_smoothing_kernel,
        coef_off=float(coef_off), coef_delta=float(coef_delta),
        num_classes=C, total_rows=B, block_rows=block_rows,
        steps_per_core=steps_per_core, mask_rows=mask_rows)

    def _tile_map(c, i):
        # Clamp padded tiles (when num_tiles % num_cores != 0) to the last
        # valid tile; their rows are masked out inside the kernel.
        t = jnp.minimum(c * steps_per_core + i, num_tiles - 1)
        return (t, 0)

    # Explicit scoped-VMEM budget: 2x double-buffered input tiles + the fused
    # f32 working set, with 2x headroom (safe on v5e's 16 MiB default and
    # well under v7x's 64 MiB physical VMEM).
    working_bytes = block_rows * C * (2 * itemsize + 16)
    vmem_limit = int(min(48 * 1024 * 1024,
                         max(32 * 1024 * 1024, 2 * working_bytes)))

    cost = pl.CostEstimate(
        flops=6 * B * C,
        transcendentals=B * C,
        bytes_accessed=B * C * itemsize + B * 4 + num_cores * 4)

    out = pl.pallas_call(
        kernel,
        out_shape=jax.ShapeDtypeStruct((num_cores, 1), jnp.float32),
        grid=(num_cores, steps_per_core),
        in_specs=[
            pl.BlockSpec((block_rows, C), _tile_map),   # pred tile
            pl.BlockSpec((block_rows, 1), _tile_map),   # target tile
        ],
        out_specs=pl.BlockSpec((1, 1), lambda c, i: (c, 0)),  # per-core partial
        compiler_params=pltpu.CompilerParams(
            dimension_semantics=("parallel", "arbitrary"),
            vmem_limit_bytes=vmem_limit),
        cost_estimate=cost,
    )(pred, tgt2d)
    # TODO(synk): Kahan-style pairing if bit-exactness matters at huge B.
    return jnp.sum(out)


def _reference_loss(pred, target, smoothing=0.1):
    # Pure-JAX reference matching the PyTorch module exactly.
    confidence = 1.0 - smoothing
    logp = jax.nn.log_softmax(pred.astype(jnp.float32), axis=-1)
    B, C = pred.shape
    true_dist = jnp.full((B, C), smoothing / (C - 1), dtype=jnp.float32)
    true_dist = true_dist.at[jnp.arange(B), target].set(confidence)
    return jnp.mean(jnp.sum(-true_dist * logp, axis=-1))


if __name__ == "__main__":
    key = jax.random.PRNGKey(0)
    k1, k2, k3, k4 = jax.random.split(key, 4)

    # Case 1: small shape consistent with the module (batch=8, num_classes=32).
    B, C = 8, 32
    pred = jax.random.normal(k1, (B, C), dtype=jnp.float32)
    target = jax.random.randint(k2, (B,), 0, C, dtype=jnp.int32)
    loss = jax.block_until_ready(label_smoothing_loss(pred, target, smoothing=0.1))
    ref = jax.block_until_ready(_reference_loss(pred, target, smoothing=0.1))
    assert jnp.allclose(loss, ref, rtol=1e-5, atol=1e-5), (loss, ref)

    # Case 2: exercises the batch grid (3 tiles) and ragged-row masking.
    B2, C2 = 20, 96
    pred2 = jax.random.normal(k3, (B2, C2), dtype=jnp.float32)
    target2 = jax.random.randint(k4, (B2,), 0, C2, dtype=jnp.int32)
    loss2 = jax.block_until_ready(
        label_smoothing_loss(pred2, target2, smoothing=0.1, block_rows=8))
    ref2 = jax.block_until_ready(_reference_loss(pred2, target2, smoothing=0.1))
    assert jnp.allclose(loss2, ref2, rtol=1e-5, atol=1e-5), (loss2, ref2)

    # Case 3: forced 2-core split (per-core partials) + bf16 input cast path.
    pred3 = pred2.astype(jnp.bfloat16)
    loss3 = jax.block_until_ready(
        label_smoothing_loss(pred3, target2, smoothing=0.1,
                             block_rows=8, num_cores=2))
    ref3 = jax.block_until_ready(_reference_loss(pred3, target2, smoothing=0.1))
    assert jnp.allclose(loss3, ref3, rtol=1e-5, atol=1e-4), (loss3, ref3)

    print("KERNEL_OK")
</pallas_src>

<mosaic_0001>
module attributes {stable_mosaic.version = 11 : i64} {
  func.func @_label_smoothing_kernel(%arg0: i32, %arg1: i32, %arg2: memref<8x32xf32, #tpu.memory_space<vmem>>, %arg3: memref<8x1xi32, #tpu.memory_space<vmem>>, %arg4: memref<1x1xf32, #tpu.memory_space<vmem>>) attributes {dimension_semantics = [#tpu.dimension_semantics<parallel>, #tpu.dimension_semantics<arbitrary>], iteration_bounds = array<i64: 1, 1>, scalar_prefetch = 0 : i64, scratch_operands = 0 : i64, tpu.core_type = #tpu.core_type<tc>, window_params = [{transform_indices = @transform_0, window_bounds = array<i64: 8, 32>}, {transform_indices = @transform_1, window_bounds = array<i64: 8, 1>}, {transform_indices = @transform_2, window_bounds = array<i64: 1, 1>}]} {
    %c0_i32 = arith.constant 0 : i32
    %0 = arith.cmpi eq, %arg1, %c0_i32 : i32
    %1 = arith.extui %0 : i1 to i32
    %c0_i32_0 = arith.constant 0 : i32
    %2 = arith.cmpi ne, %1, %c0_i32_0 : i32
    scf.if %2 {
      %cst_16 = arith.constant 0.000000e+00 : f32
      %38 = vector.broadcast %cst_16 : f32 to vector<1x1xf32>
      %c0_17 = arith.constant 0 : index
      %c0_18 = arith.constant 0 : index
      %39 = vector.load %arg4[%c0_17, %c0_18] : memref<1x1xf32, #tpu.memory_space<vmem>>, vector<1x1xf32>
      tpu.vector_store %arg4[%c0_17, %c0_18], %38 {strides = array<i32>} : memref<1x1xf32, #tpu.memory_space<vmem>>, vector<1x1xf32>,
    } else {
    }
    %c0 = arith.constant 0 : index
    %c0_1 = arith.constant 0 : index
    %3 = vector.load %arg2[%c0, %c0_1] : memref<8x32xf32, #tpu.memory_space<vmem>>, vector<8x32xf32>
    %cst = arith.constant dense<0xFF800000> : vector<8xf32>
    %4 = vector.multi_reduction <maximumf>, %3, %cst [1] : vector<8x32xf32> to vector<8xf32>
    %5 = vector.shape_cast %4 : vector<8xf32> to vector<8x1xf32>
    %cst_2 = arith.constant dense<0.000000e+00> : vector<8xf32>
    %6 = vector.multi_reduction <add>, %3, %cst_2 [1] : vector<8x32xf32> to vector<8xf32>
    %7 = vector.shape_cast %6 : vector<8xf32> to vector<8x1xf32>
    %8 = tpu.iota {dimensions = array<i32: 1>} : vector<1x32xi32>
    %c0_3 = arith.constant 0 : index
    %c0_4 = arith.constant 0 : index
    %9 = vector.load %arg3[%c0_3, %c0_4] : memref<8x1xi32, #tpu.memory_space<vmem>>, vector<8x1xi32>
    %10 = vector.broadcast %8 : vector<1x32xi32> to vector<8x32xi32>
    %11 = vector.broadcast %9 : vector<8x1xi32> to vector<8x32xi32>
    %12 = arith.cmpi eq, %10, %11 : vector<8x32xi32>
    %cst_5 = arith.constant 0.000000e+00 : f32
    %13 = vector.broadcast %cst_5 : f32 to vector<8x32xf32>
    %14 = arith.select %12, %3, %13 : vector<8x32xi1>, vector<8x32xf32>
    %cst_6 = arith.constant dense<0.000000e+00> : vector<8xf32>
    %15 = vector.multi_reduction <add>, %14, %cst_6 [1] : vector<8x32xf32> to vector<8xf32>
    %16 = vector.shape_cast %15 : vector<8xf32> to vector<8x1xf32>
    %17 = vector.broadcast %5 : vector<8x1xf32> to vector<8x32xf32>
    %18 = arith.subf %3, %17 : vector<8x32xf32>
    %19 = math.exp %18 : vector<8x32xf32>
    %cst_7 = arith.constant dense<0.000000e+00> : vector<8xf32>
    %20 = vector.multi_reduction <add>, %19, %cst_7 [1] : vector<8x32xf32> to vector<8xf32>
    %21 = vector.shape_cast %20 : vector<8xf32> to vector<8x1xf32>
    %22 = math.log %21 : vector<8x1xf32>
    %23 = arith.addf %5, %22 : vector<8x1xf32>
    %cst_8 = arith.constant 3.200000e+01 : f32
    %24 = vector.broadcast %cst_8 : f32 to vector<8x1xf32>
    %25 = arith.mulf %24, %23 : vector<8x1xf32>
    %26 = arith.subf %7, %25 : vector<8x1xf32>
    %cst_9 = arith.constant -4.032258E-4 : f32
    %27 = vector.broadcast %cst_9 : f32 to vector<8x1xf32>
    %28 = arith.mulf %27, %26 : vector<8x1xf32>
    %29 = arith.subf %16, %23 : vector<8x1xf32>
    %cst_10 = arith.constant -0.112096772 : f32
    %30 = vector.broadcast %cst_10 : f32 to vector<8x1xf32>
    %31 = arith.mulf %30, %29 : vector<8x1xf32>
    %32 = arith.addf %28, %31 : vector<8x1xf32>
    %c0_11 = arith.constant 0 : index
    %c0_12 = arith.constant 0 : index
    %33 = vector.load %arg4[%c0_11, %c0_12] : memref<1x1xf32, #tpu.memory_space<vmem>>, vector<1x1xf32>
    %cst_13 = arith.constant dense<0.000000e+00> : vector<1xf32>
    %34 = vector.multi_reduction <add>, %32, %cst_13 [0] : vector<8x1xf32> to vector<1xf32>
    %35 = vector.shape_cast %34 : vector<1xf32> to vector<1x1xf32>
    %36 = arith.addf %33, %35 : vector<1x1xf32>
    %c0_14 = arith.constant 0 : index
    %c0_15 = arith.constant 0 : index
    %37 = vector.load %arg4[%c0_14, %c0_15] : memref<1x1xf32, #tpu.memory_space<vmem>>, vector<1x1xf32>
    tpu.vector_store %arg4[%c0_14, %c0_15], %36 {strides = array<i32>} : memref<1x1xf32, #tpu.memory_space<vmem>>, vector<1x1xf32>,
    return
  }
  func.func @transform_0(%arg0: i32, %arg1: i32) -> (i32, i32) {
    %c1_i32 = arith.constant 1 : i32
    %0 = arith.muli %arg0, %c1_i32 : i32
    %1 = arith.addi %0, %arg1 : i32
    %c0_i32 = arith.constant 0 : i32
    %2 = arith.minsi %1, %c0_i32 : i32
    %c0_i32_0 = arith.constant 0 : i32
    %c0_i32_1 = arith.constant 0 : i32
    return %2, %c0_i32_0 : i32, i32
  }
  func.func @transform_1(%arg0: i32, %arg1: i32) -> (i32, i32) {
    %c1_i32 = arith.constant 1 : i32
    %0 = arith.muli %arg0, %c1_i32 : i32
    %1 = arith.addi %0, %arg1 : i32
    %c0_i32 = arith.constant 0 : i32
    %2 = arith.minsi %1, %c0_i32 : i32
    %c0_i32_0 = arith.constant 0 : i32
    %c0_i32_1 = arith.constant 0 : i32
    return %2, %c0_i32_0 : i32, i32
  }
  func.func @transform_2(%arg0: i32, %arg1: i32) -> (i32, i32) {
    %c0_i32 = arith.constant 0 : i32
    %c0_i32_0 = arith.constant 0 : i32
    return %arg0, %c0_i32 : i32, i32
  }
}

</mosaic_0001>

<bundles_post_ra>
// kernel: tpu_custom_call.1
= control target key start
LH: loop header
LB: loop body
LE: loop exit
PB: predicated region body
PF: predicated region fallthrough
CT: control target
= control target key end

     0   :  { %vm73_vm0 = vcmask 261120   ;;  %s216_s0 = inlined_call_operand.vmem [shape: f32[8,32], index: 0, kind: input, shape index: {}]   ;;  %s217_s1 = inlined_call_operand.vmem [shape: s32[8,1], index: 1, kind: input, shape index: {}]   ;;  %s218_s2 = inlined_call_operand.hbm [shape: f32[1,1], index: 2, kind: output, shape index: {}]  }
   0x1   :  { %v72_v0 = vld [vmem:[%s216_s0] sm:$0xff] }
   0x2   :  { %7 = vsyncpa [#allocation3], 0  ;;  %v74_v1 = vsel %vm73_vm0, %v72_v0, -inf  ;;  %v174_v2 = vmov 0   ;;  %v82_v3 = vld [vmem:[%s217_s1] sm:$0xff]  ;;  %v80_v7 = vlaneseq  ;;  %v77_v12 = vsel %vm73_vm0, %v72_v0, 0.0 }
   0x3   :  { %145 = vset.pattern.permute.xlu0 %v174_v2  ;;  %vm70_vm2 = vcmask 0   ;;  %v175_v15 = vmov 0.0   ;;  %s176_s0 = smov [#allocation2]  }
   0x4   :  { %75 = vmax.xlane.f32.xlu0 %v74_v1  ;;  %v81_v8 = vand.u32 127, %v80_v7  ;;  %71 = vst.msk [vmem:[#allocation2] sm:$0x1] %vm70_vm2, %v175_v15  ;;  %s122_s1 = sshll.u32 %s176_s0, 4  ;;  %s123_s1 = int_to_ptr.vmem [resolvable:$true] %s122_s1 }
   0x5   :  { %s150_s13 = scalar_lea.vmem %s123_s1, 16  ;;  %s154_s14 = scalar_lea.vmem %s123_s1, 32 }
   0x6   :  { %p151_p0 = scmp.ne.s32.totalorder %s123_s1, %s150_s13  ;;  %p155_p1 = scmp.lt.s32.totalorder %s123_s1, %s123_s1 }
   0x7   :  { %p156_p2 = scmp.lt.s32.totalorder %s154_s14, %s150_s13 }
   0x9   :  { %p157_p3 = por %p156_p2, %p155_p1 }
   0xb   :  { %v106_v33 = vld [vmem:[#allocation2] sm:$0x1]  ;;  %p158_p4 = pnand %p157_p3, %p151_p0 }
  0x1a   :  { %84 = vperm.xlu0 %145, %v82_v3  }
  0x91   :  { %v76_v4 = vpop.xlane.xlu0 %75 }
  0x92   :  { %v91_v5 = vsub.f32 %v72_v0, %v76_v4 }
  0x94   :  { %v92_v6 = vmul.f32 1.442695, %v91_v5 }
  0x96   :  { %146 = vpow2.f32 %v92_v6 }
  0x99   :  { %v85_v9 = vpop.permute.xlu0 %84 }
  0x9a   :  { %vm86_vm1 = vcmp.eq.s32.totalorder %v81_v8, %v85_v9 }
  0x9b   :  { %v87_v13 = vsel %vm86_vm1, %v72_v0, 0.0 }
  0x9c   :  { %v88_v14 = vsel %vm73_vm0, %v87_v13, 0.0 }
  0xa0   :  { %v147_v10 = vpop.eup %146 }
  0xa1   :  { %v94_v11 = vsel %vm73_vm0, %v147_v10, 0.0 }
  0xa2   :  { %95 = vadd.xlane.f32.xlu1 %v94_v11 }
  0xa6   :  { %78 = vadd.xlane.f32.xlu1 %v77_v12 }
  0xaa   :  { %89 = vadd.xlane.f32.xlu1 %v88_v14 }
 0x12f   :  { %v96_v16 = vpop.xlane.xlu1 %95 }
 0x130   :  { %148 = vlog2.f32 %v96_v16 }
 0x133   :  { %v79_v17 = vpop.xlane.xlu1 %78 }
 0x137   :  { %v90_v20 = vpop.xlane.xlu1 %89 }
 0x13a   :  { %v149_v18 = vpop.eup %148 }
 0x13b   :  { %v98_v19 = vmul.f32 0.6931472, %v149_v18 }
 0x13d   :  { %v99_v21 = vadd.f32 %v98_v19, %v76_v4 }
 0x13f   :  { %v100_v22 = vmul.f32 32.0, %v99_v21  ;;  %v103_v23 = vsub.f32 %v90_v20, %v99_v21 }
 0x141   :  { %v101_v24 = vsub.f32 %v79_v17, %v100_v22  ;;  %v104_v26 = vmul.f32 -0.11209677, %v103_v23 }
 0x143   :  { %v102_v25 = vmul.f32 -0.0004032258, %v101_v24 }
 0x145   :  { %v105_v27 = vadd.f32 %v104_v26, %v102_v25 }
 0x147   :  { %v107_v28 = vrot.slane %v105_v27, 4 }
 0x149   :  { %v108_v29 = vadd.f32 %v107_v28, %v105_v27 }
 0x14b   :  { %v109_v30 = vrot.slane %v108_v29, 2 }
 0x14d   :  { %v110_v31 = vadd.f32 %v109_v30, %v108_v29 }
 0x14f   :  { %v111_v32 = vrot.slane %v110_v31, 1 }
 0x151   :  { %v112_v34 = vadd.f32 %v111_v32, %v110_v31 }
 0x153   :  { %v113_v35 = vadd.f32 %v112_v34, %v106_v33 }
 0x155   :  { %115 = vst.msk [vmem:[#allocation2] sm:$0x1] %vm70_vm2, %v113_v35 }
 0x156   :  { %161 = shalt.err (!%p158_p4)
}
 0x157   :  { %s162_s17 = scalar_lea.hbm %s218_s2, 16 }
 0x158   :  { %p163_p5 = scmp.ne.s32.totalorder %s218_s2, %s162_s17  ;;  %p166_p6 = scmp.lt.u32.totalorder %s162_s17, %s218_s2 }
 0x15a   :  { %p168_p7 = pnand %p166_p6, %p163_p5 }
 0x15c   :  { %171 = shalt.err (!%p168_p7)
}
 0x15d   :  { %125 = dma.vmem_to_hbm [thread:$0]  %s123_s1, 16, %s218_s2, [#allocation3]  }
 0x15e   :  { %172 = dma.done.wait [#allocation3], 16  }
 0x15f   :  { %173 = vsyncadd [#allocation3], 4294967280 }
 0x160   :  { %129 = vsyncpa [#allocation3], 1 }

</bundles_post_ra>
